<compile_context>
chip_gen: v5e
topology: v5e:2x2
jax: 0.10.0
libtpu: 0.0.40
codegen_flags: <defaults>
</compile_context>

<pallas_src>
import jax
import jax.numpy as jnp
from jax.experimental import pallas as pl
from jax.experimental.pallas import tpu as pltpu


_LANE = 128                             # TPU lane width
_MAX_COLS = 2048                        # lane-dense width target (multiple of 128)
_TARGET_TILE_BYTES = 4 * 1024 * 1024    # ~4 MiB blocks: in+out double-buffered
                                        # = 16 MiB < 32 MiB default scoped VMEM
                                        # on every generation (incl. v7x).


def _identity_kernel(x_ref, o_ref):
    # Pure copy of the current tile.
    o_ref[...] = x_ref[...]


def _identity_copy_2d(x2d, tile_rows):
    rows, cols = x2d.shape
    grid_r = pl.cdiv(rows, tile_rows)
    return pl.pallas_call(
        _identity_kernel,
        out_shape=jax.ShapeDtypeStruct((rows, cols), x2d.dtype),
        grid=(grid_r,),
        in_specs=[pl.BlockSpec((tile_rows, cols), lambda i: (i, 0))],
        out_specs=pl.BlockSpec((tile_rows, cols), lambda i: (i, 0)),
        # Identity: let XLA donate the input buffer so the kernel is (at worst)
        # an in-place touch instead of 2x HBM traffic.
        input_output_aliases={0: 0},
        compiler_params=pltpu.CompilerParams(
            # Single grid axis marked parallel -> shards across the 2 TCs on v7x;
            # no-op on v5e/v6e.
            dimension_semantics=("parallel",),
        ),
    )(x2d)


def logger_forward(data):
    """Pallas equivalent of Logger.forward: print shape, return data unchanged."""
    # Side effect (trace-time, matches PyTorch's `print('Logger', data.shape)`).
    print("Logger", data.shape)

    shape = data.shape
    n = data.size
    if n == 0:
        # Empty tensor: nothing to copy; short-circuit (avoids a 0-sized grid).
        return data

    flat = data.reshape(-1)
    itemsize = jnp.dtype(data.dtype).itemsize

    # Lane-dense 2D view: pad the flat tail to a multiple of 128 if needed
    # (pad == 0 for typical shapes), slice it off again after the copy.
    pad = (-n) % _LANE
    if pad:
        flat = jnp.pad(flat, (0, pad))
    n_padded = n + pad

    cols = _LANE
    while cols * 2 <= _MAX_COLS and n_padded % (cols * 2) == 0:
        cols *= 2
    rows = n_padded // cols
    x2d = flat.reshape(rows, cols)

    # Byte-based tile sizing (~4 MiB per block), row count a multiple of 8.
    tile_rows = (_TARGET_TILE_BYTES // (cols * itemsize)) // 8 * 8
    tile_rows = max(8, tile_rows)
    if tile_rows >= rows:
        tile_rows = rows  # single full-extent block; (8,128) rule satisfied.

    out2d = _identity_copy_2d(x2d, tile_rows)

    out_flat = out2d.reshape(-1)
    if pad:
        out_flat = out_flat[:n]
    return out_flat.reshape(shape)


if __name__ == "__main__":
    key = jax.random.PRNGKey(0)
    # Small NCHW-style input consistent with typical usage of the module.
    x = jax.random.normal(key, (2, 4, 16, 16), dtype=jnp.float32)

    out = logger_forward(x)
    out = jax.block_until_ready(out)

    assert out.shape == x.shape
    assert out.dtype == x.dtype
    assert bool(jnp.all(out == x))
    print("KERNEL_OK")
</pallas_src>

<mosaic_0001>
module attributes {stable_mosaic.version = 11 : i64} {
  func.func @_identity_kernel(%arg0: i32, %arg1: memref<1x2048xf32, #tpu.memory_space<vmem>>, %arg2: memref<1x2048xf32, #tpu.memory_space<vmem>>) attributes {dimension_semantics = [#tpu.dimension_semantics<parallel>], iteration_bounds = array<i64: 1>, scalar_prefetch = 0 : i64, scratch_operands = 0 : i64, tpu.core_type = #tpu.core_type<tc>, window_params = [{transform_indices = @transform_0, window_bounds = array<i64: 1, 2048>}, {transform_indices = @transform_1, window_bounds = array<i64: 1, 2048>}]} {
    %c0 = arith.constant 0 : index
    %c0_0 = arith.constant 0 : index
    %0 = vector.load %arg1[%c0, %c0_0] : memref<1x2048xf32, #tpu.memory_space<vmem>>, vector<1x2048xf32>
    %c0_1 = arith.constant 0 : index
    %c0_2 = arith.constant 0 : index
    %1 = vector.load %arg2[%c0_1, %c0_2] : memref<1x2048xf32, #tpu.memory_space<vmem>>, vector<1x2048xf32>
    tpu.vector_store %arg2[%c0_1, %c0_2], %0 {strides = array<i32>} : memref<1x2048xf32, #tpu.memory_space<vmem>>, vector<1x2048xf32>,
    return
  }
  func.func @transform_0(%arg0: i32) -> (i32, i32) {
    %c0_i32 = arith.constant 0 : i32
    %c0_i32_0 = arith.constant 0 : i32
    return %arg0, %c0_i32 : i32, i32
  }
  func.func @transform_1(%arg0: i32) -> (i32, i32) {
    %c0_i32 = arith.constant 0 : i32
    %c0_i32_0 = arith.constant 0 : i32
    return %arg0, %c0_i32 : i32, i32
  }
}

</mosaic_0001>

<bundles_post_ra>
// kernel: tpu_custom_call.1
= control target key start
LH: loop header
LB: loop body
LE: loop exit
PB: predicated region body
PF: predicated region fallthrough
CT: control target
= control target key end

     0   :  { %6 = vsyncpa [#allocation3], 0  ;;  %s116_s0 = inlined_call_operand.hbm [shape: f32[1,2048], index: 0, kind: input, shape index: {}, may-alias: {0,1}]   ;;  %s117_s1 = inlined_call_operand.hbm [shape: f32[1,2048], index: 1, kind: output, shape index: {}, may-alias: {0,1}]  }
   0x1   :  { %7 = vsyncpa [#allocation4], 0  ;;  %s13_s8 = sshll.u32 %s116_s0, 4  ;;  %s98_s9 = smov [#allocation2]   ;;  %s14_s8 = int_to_ptr.hbm [resolvable:$true] %s13_s8 }
   0x2   :  { %s15_s10 = sshll.u32 %s98_s9, 4  ;;  %s16_s10 = int_to_ptr.vmem [resolvable:$true] %s15_s10 }
   0x3   :  { %18 = dma.hbm_to_vmem [thread:$0]  %s14_s8, 256, %s16_s10, [#allocation3]  }
   0x4   :  { %94 = dma.done.wait [#allocation3], 256  }
   0x5   :  { %95 = vsyncadd [#allocation3], 4294967040  ;;  %s99_s11 = smov [#allocation5]   ;;  %s34_s15 = sshll.u32 %s117_s1, 4  ;;  %v23_v0 = vld [vmem:[#allocation2] sm:$0xff]  ;;  %v24_v1 = vld [vmem:[#allocation2 + $0x8] sm:$0xff]  ;;  %s35_s15 = int_to_ptr.hbm [resolvable:$true] %s34_s15 }
   0x6   :  { %s32_s12 = sshll.u32 %s99_s11, 4  ;;  %25 = vst [vmem:[#allocation5] sm:$0xff] %v23_v0  ;;  %s33_s12 = int_to_ptr.vmem [resolvable:$true] %s32_s12 }
   0x7   :  { %26 = vst [vmem:[#allocation5 + $0x8] sm:$0xff] %v24_v1 }
   0x8   :  { %37 = dma.vmem_to_hbm [thread:$0]  %s33_s12, 256, %s35_s15, [#allocation4]  }
   0x9   :  { %96 = dma.done.wait [#allocation4], 256  }
   0xa   :  { %97 = vsyncadd [#allocation4], 4294967040 }
   0xb   :  { %42 = vsyncpa [#allocation3], 1 }
   0xc   :  { %43 = vsyncpa [#allocation4], 1 }

</bundles_post_ra>
